<compile_context>
chip_gen: v6e
topology: v6e:2x2x1
jax: 0.10.0
libtpu: 0.0.40
codegen_flags: <defaults>
</compile_context>

<pallas_src>
import jax
import jax.numpy as jnp
from jax.experimental import pallas as pl
from jax.experimental.pallas import tpu as pltpu


def _disc_xx_kernel(x_ref, rx_ref, w1a_ref, w1b_ref, b1_ref, w2r_ref, b2_ref,
                    out_ref, inter_ref):
    """Fused fc1 (split over the concat) + LeakyReLU + fc2 on one batch tile."""
    # fc1: x @ w1[:121] + rec_x @ w1[121:] + b1   (equivalent to cat(x,rec_x) @ w1)
    h = jnp.dot(x_ref[...], w1a_ref[...], preferred_element_type=jnp.float32)
    h = h + jnp.dot(rx_ref[...], w1b_ref[...], preferred_element_type=jnp.float32)
    h = h + b1_ref[...]                                          # [TB, 128]

    # LeakyReLU (PyTorch default negative_slope = 0.01)
    h = jnp.where(h > 0, h, 0.01 * h)

    # dropout(p=0.2) in eval mode == identity
    inter_ref[...] = h                                           # [TB, 128]

    # fc2 as VPU multiply + lane reduce (avoids a wasteful N=1 MXU matmul)
    out_ref[...] = (jnp.sum(h * w2r_ref[...], axis=-1, keepdims=True)
                    + b2_ref[...])                               # [TB, 1]


def discriminator_xx_forward(x, rec_x, params, block_b=2048):
    """Wrapper: split fc1 weight in JAX glue; hot path runs in Pallas."""
    w1, b1, w2, b2 = params["w1"], params["b1"], params["w2"], params["b2"]

    B, F_half = x.shape                                          # F_half = 121
    H = w1.shape[1]                                              # 128

    # Split fc1 weights so the kernel never needs the concatenated input.
    w1a = w1[:F_half]                                            # [121, 128]
    w1b = w1[F_half:]                                            # [121, 128]
    w2_row = w2.reshape(1, H)                                    # [1, 128]

    # Batch tile: multiple of 8 (f32 sublane), capped for VMEM pipelining.
    TB = min(block_b, ((B + 7) // 8) * 8)
    grid = (pl.cdiv(B, TB),)

    flops = 2 * B * (2 * F_half * H + H)                         # fc1 + fc2
    bytes_accessed = (B * (2 * F_half + H + 1) * 4               # acts in/out
                      + (2 * F_half * H + H + H + 1) * 4)        # weights

    out, inter = pl.pallas_call(
        _disc_xx_kernel,
        out_shape=(
            jax.ShapeDtypeStruct((B, 1), jnp.float32),           # out (pre-sigmoid logits)
            jax.ShapeDtypeStruct((B, H), jnp.float32),           # intermediate_layer
        ),
        grid=grid,
        in_specs=[
            pl.BlockSpec((TB, F_half), lambda i: (i, 0)),        # x tile
            pl.BlockSpec((TB, F_half), lambda i: (i, 0)),        # rec_x tile
            pl.BlockSpec((F_half, H), lambda i: (0, 0)),         # w1a (resident)
            pl.BlockSpec((F_half, H), lambda i: (0, 0)),         # w1b (resident)
            pl.BlockSpec((1, H), lambda i: (0, 0)),              # b1
            pl.BlockSpec((1, H), lambda i: (0, 0)),              # w2 row
            pl.BlockSpec((1, 1), lambda i: (0, 0)),              # b2
        ],
        out_specs=(
            pl.BlockSpec((TB, 1), lambda i: (i, 0)),
            pl.BlockSpec((TB, H), lambda i: (i, 0)),
        ),
        compiler_params=pltpu.CompilerParams(
            dimension_semantics=("parallel",),
        ),
        cost_estimate=pl.CostEstimate(
            flops=flops, transcendentals=0, bytes_accessed=bytes_accessed),
    )(x, rec_x, w1a, w1b, b1, w2_row, b2)
    return out, inter


def init_params(key, in_features=242, hidden=128):
    """Deterministic init mimicking nn.Linear (uniform +/- 1/sqrt(fan_in))."""
    k1, k2, k3, k4 = jax.random.split(key, 4)
    bound1 = 1.0 / jnp.sqrt(in_features)
    bound2 = 1.0 / jnp.sqrt(hidden)
    return {
        # stored as [in, out] (transpose of PyTorch's [out, in])
        "w1": jax.random.uniform(k1, (in_features, hidden), jnp.float32,
                                 -bound1, bound1),
        "b1": jax.random.uniform(k2, (1, hidden), jnp.float32, -bound1, bound1),
        "w2": jax.random.uniform(k3, (hidden, 1), jnp.float32, -bound2, bound2),
        "b2": jax.random.uniform(k4, (1, 1), jnp.float32, -bound2, bound2),
    }


if __name__ == "__main__":
    key = jax.random.PRNGKey(0)
    kp, kx, kr = jax.random.split(key, 3)

    params = init_params(kp)

    B = 8
    x = jax.random.normal(kx, (B, 121), jnp.float32)
    rec_x = jax.random.normal(kr, (B, 121), jnp.float32)

    out, inter = discriminator_xx_forward(x, rec_x, params)
    jax.block_until_ready((out, inter))

    # sanity-check against plain JAX reference (same math as the PyTorch module)
    x_cat = jnp.concatenate([x, rec_x], axis=1)
    h_ref = x_cat @ params["w1"] + params["b1"]
    h_ref = jnp.where(h_ref > 0, h_ref, 0.01 * h_ref)
    out_ref = h_ref @ params["w2"] + params["b2"]
    assert jnp.allclose(out, out_ref, atol=1e-4, rtol=1e-4)
    assert jnp.allclose(inter, h_ref, atol=1e-4, rtol=1e-4)
    assert out.shape == (B, 1) and inter.shape == (B, 128)

    print("KERNEL_OK")
</pallas_src>

<mosaic_0001>
module attributes {stable_mosaic.version = 11 : i64} {
  func.func @_disc_xx_kernel(%arg0: i32, %arg1: memref<8x121xf32, #tpu.memory_space<vmem>>, %arg2: memref<8x121xf32, #tpu.memory_space<vmem>>, %arg3: memref<121x128xf32, #tpu.memory_space<vmem>>, %arg4: memref<121x128xf32, #tpu.memory_space<vmem>>, %arg5: memref<1x128xf32, #tpu.memory_space<vmem>>, %arg6: memref<1x128xf32, #tpu.memory_space<vmem>>, %arg7: memref<1x1xf32, #tpu.memory_space<vmem>>, %arg8: memref<8x1xf32, #tpu.memory_space<vmem>>, %arg9: memref<8x128xf32, #tpu.memory_space<vmem>>) attributes {dimension_semantics = [#tpu.dimension_semantics<parallel>], iteration_bounds = array<i64: 1>, scalar_prefetch = 0 : i64, scratch_operands = 0 : i64, tpu.core_type = #tpu.core_type<tc>, window_params = [{transform_indices = @transform_0, window_bounds = array<i64: 8, 121>}, {transform_indices = @transform_1, window_bounds = array<i64: 8, 121>}, {pipeline_mode = #tpu.pipeline_mode<synchronous>, transform_indices = @transform_2, window_bounds = array<i64: 121, 128>}, {pipeline_mode = #tpu.pipeline_mode<synchronous>, transform_indices = @transform_3, window_bounds = array<i64: 121, 128>}, {pipeline_mode = #tpu.pipeline_mode<synchronous>, transform_indices = @transform_4, window_bounds = array<i64: 1, 128>}, {pipeline_mode = #tpu.pipeline_mode<synchronous>, transform_indices = @transform_5, window_bounds = array<i64: 1, 128>}, {pipeline_mode = #tpu.pipeline_mode<synchronous>, transform_indices = @transform_6, window_bounds = array<i64: 1, 1>}, {transform_indices = @transform_7, window_bounds = array<i64: 8, 1>}, {transform_indices = @transform_8, window_bounds = array<i64: 8, 128>}]} {
    %c0 = arith.constant 0 : index
    %c0_0 = arith.constant 0 : index
    %0 = vector.load %arg1[%c0, %c0_0] : memref<8x121xf32, #tpu.memory_space<vmem>>, vector<8x121xf32>
    %c0_1 = arith.constant 0 : index
    %c0_2 = arith.constant 0 : index
    %1 = vector.load %arg3[%c0_1, %c0_2] : memref<121x128xf32, #tpu.memory_space<vmem>>, vector<121x128xf32>
    %cst = arith.constant dense<0.000000e+00> : vector<8x128xf32>
    %2 = tpu.matmul %0, %1, %cst {dimension_numbers = #tpu.dot_dimension_numbers<[1], [0], [0], [1], [0, 0, 1, 1], [], []>} : vector<8x121xf32>, vector<121x128xf32>, vector<8x128xf32> -> vector<8x128xf32>
    %c0_3 = arith.constant 0 : index
    %c0_4 = arith.constant 0 : index
    %3 = vector.load %arg2[%c0_3, %c0_4] : memref<8x121xf32, #tpu.memory_space<vmem>>, vector<8x121xf32>
    %c0_5 = arith.constant 0 : index
    %c0_6 = arith.constant 0 : index
    %4 = vector.load %arg4[%c0_5, %c0_6] : memref<121x128xf32, #tpu.memory_space<vmem>>, vector<121x128xf32>
    %cst_7 = arith.constant dense<0.000000e+00> : vector<8x128xf32>
    %5 = tpu.matmul %3, %4, %cst_7 {dimension_numbers = #tpu.dot_dimension_numbers<[1], [0], [0], [1], [0, 0, 1, 1], [], []>} : vector<8x121xf32>, vector<121x128xf32>, vector<8x128xf32> -> vector<8x128xf32>
    %6 = arith.addf %2, %5 : vector<8x128xf32>
    %c0_8 = arith.constant 0 : index
    %c0_9 = arith.constant 0 : index
    %7 = vector.load %arg5[%c0_8, %c0_9] : memref<1x128xf32, #tpu.memory_space<vmem>>, vector<1x128xf32>
    %8 = vector.broadcast %7 : vector<1x128xf32> to vector<8x128xf32>
    %9 = arith.addf %6, %8 : vector<8x128xf32>
    %cst_10 = arith.constant 0.000000e+00 : f32
    %10 = vector.broadcast %cst_10 : f32 to vector<8x128xf32>
    %11 = arith.cmpf ogt, %9, %10 : vector<8x128xf32>
    %cst_11 = arith.constant 0.00999999977 : f32
    %12 = vector.broadcast %cst_11 : f32 to vector<8x128xf32>
    %13 = arith.mulf %12, %9 : vector<8x128xf32>
    %14 = arith.select %11, %9, %13 : vector<8x128xi1>, vector<8x128xf32>
    %c0_12 = arith.constant 0 : index
    %c0_13 = arith.constant 0 : index
    %15 = vector.load %arg9[%c0_12, %c0_13] : memref<8x128xf32, #tpu.memory_space<vmem>>, vector<8x128xf32>
    tpu.vector_store %arg9[%c0_12, %c0_13], %14 {strides = array<i32>} : memref<8x128xf32, #tpu.memory_space<vmem>>, vector<8x128xf32>,
    %c0_14 = arith.constant 0 : index
    %c0_15 = arith.constant 0 : index
    %16 = vector.load %arg6[%c0_14, %c0_15] : memref<1x128xf32, #tpu.memory_space<vmem>>, vector<1x128xf32>
    %17 = vector.broadcast %16 : vector<1x128xf32> to vector<8x128xf32>
    %18 = arith.mulf %14, %17 : vector<8x128xf32>
    %cst_16 = arith.constant dense<0.000000e+00> : vector<8xf32>
    %19 = vector.multi_reduction <add>, %18, %cst_16 [1] : vector<8x128xf32> to vector<8xf32>
    %20 = vector.shape_cast %19 : vector<8xf32> to vector<8x1xf32>
    %c0_17 = arith.constant 0 : index
    %c0_18 = arith.constant 0 : index
    %21 = vector.load %arg7[%c0_17, %c0_18] : memref<1x1xf32, #tpu.memory_space<vmem>>, vector<1x1xf32>
    %22 = vector.broadcast %21 : vector<1x1xf32> to vector<8x1xf32>
    %23 = arith.addf %20, %22 : vector<8x1xf32>
    %c0_19 = arith.constant 0 : index
    %c0_20 = arith.constant 0 : index
    %24 = vector.load %arg8[%c0_19, %c0_20] : memref<8x1xf32, #tpu.memory_space<vmem>>, vector<8x1xf32>
    tpu.vector_store %arg8[%c0_19, %c0_20], %23 {strides = array<i32>} : memref<8x1xf32, #tpu.memory_space<vmem>>, vector<8x1xf32>,
    return
  }
  func.func @transform_0(%arg0: i32) -> (i32, i32) {
    %c0_i32 = arith.constant 0 : i32
    %c0_i32_0 = arith.constant 0 : i32
    return %arg0, %c0_i32 : i32, i32
  }
  func.func @transform_1(%arg0: i32) -> (i32, i32) {
    %c0_i32 = arith.constant 0 : i32
    %c0_i32_0 = arith.constant 0 : i32
    return %arg0, %c0_i32 : i32, i32
  }
  func.func @transform_2(%arg0: i32) -> (i32, i32) {
    %c0_i32 = arith.constant 0 : i32
    %c0_i32_0 = arith.constant 0 : i32
    %c0_i32_1 = arith.constant 0 : i32
    return %c0_i32, %c0_i32_0 : i32, i32
  }
  func.func @transform_3(%arg0: i32) -> (i32, i32) {
    %c0_i32 = arith.constant 0 : i32
    %c0_i32_0 = arith.constant 0 : i32
    %c0_i32_1 = arith.constant 0 : i32
    return %c0_i32, %c0_i32_0 : i32, i32
  }
  func.func @transform_4(%arg0: i32) -> (i32, i32) {
    %c0_i32 = arith.constant 0 : i32
    %c0_i32_0 = arith.constant 0 : i32
    %c0_i32_1 = arith.constant 0 : i32
    return %c0_i32, %c0_i32_0 : i32, i32
  }
  func.func @transform_5(%arg0: i32) -> (i32, i32) {
    %c0_i32 = arith.constant 0 : i32
    %c0_i32_0 = arith.constant 0 : i32
    %c0_i32_1 = arith.constant 0 : i32
    return %c0_i32, %c0_i32_0 : i32, i32
  }
  func.func @transform_6(%arg0: i32) -> (i32, i32) {
    %c0_i32 = arith.constant 0 : i32
    %c0_i32_0 = arith.constant 0 : i32
    %c0_i32_1 = arith.constant 0 : i32
    return %c0_i32, %c0_i32_0 : i32, i32
  }
  func.func @transform_7(%arg0: i32) -> (i32, i32) {
    %c0_i32 = arith.constant 0 : i32
    %c0_i32_0 = arith.constant 0 : i32
    return %arg0, %c0_i32 : i32, i32
  }
  func.func @transform_8(%arg0: i32) -> (i32, i32) {
    %c0_i32 = arith.constant 0 : i32
    %c0_i32_0 = arith.constant 0 : i32
    return %arg0, %c0_i32 : i32, i32
  }
}

</mosaic_0001>

<bundles_post_ra>
// kernel: tpu_custom_call.1
= control target key start
LH: loop header
LB: loop body
LE: loop exit
PB: predicated region body
PF: predicated region fallthrough
CT: control target
= control target key end

     0   :  { %s666_s0 = inlined_call_operand.hbm [shape: f32[8,121], index: 0, kind: input, shape index: {}]   ;;  %s667_s1 = inlined_call_operand.hbm [shape: f32[8,121], index: 1, kind: input, shape index: {}]   ;;  %s668_s2 = inlined_call_operand.hbm [shape: f32[121,128], index: 2, kind: input, shape index: {}]   ;;  %s669_s3 = inlined_call_operand.hbm [shape: f32[121,128], index: 3, kind: input, shape index: {}]   ;;  %s670_s4 = inlined_call_operand.vmem [shape: f32[1,128], index: 4, kind: input, shape index: {}]   ;;  %s671_s5 = inlined_call_operand.vmem [shape: f32[1,128], index: 5, kind: input, shape index: {}]   ;;  %s672_s6 = inlined_call_operand.<no memory space> [shape: f32[1,1], index: 6, kind: input, shape index: {}]   ;;  %s673_s7 = inlined_call_operand.vmem [shape: f32[8,1], index: 7, kind: output, shape index: {0}]   ;;  %s674_s8 = inlined_call_operand.hbm [shape: f32[8,128], index: 8, kind: output, shape index: {1}]  }
   0x1   :  { %v14_v0 = vstv %s672_s6 }
   0x2   :  { %15 = vst [vmem:[#allocation2] sm:$0x1] %v14_v0 }
   0x3   :  { %16 = vsyncpa [#allocation4], 0 }
   0x4   :  { %17 = vsyncpa [#allocation7], 0 }
   0x5   :  { %18 = vsyncpa [#allocation10], 0 }
   0x6   :  { %19 = vsyncpa [#allocation5], 0  ;;  %s551_s29 = smov [#allocation6]   ;;  %s552_s9 = smov [#allocation3]  }
   0x7   :  { %s36_s30 = sshll.u32 %s551_s29, 4  ;;  %s26_s10 = sshll.u32 %s552_s9, 4  ;;  %s37_s30 = int_to_ptr.vmem [resolvable:$true] %s36_s30  ;;  %s27_s10 = int_to_ptr.vmem [resolvable:$true] %s26_s10 }
   0x8   :  { %s451_s11 = scalar_lea.vmem %s37_s30, 128  ;;  %p456_p1 = scmp.lt.s32.totalorder %s37_s30, %s37_s30 }
   0x9   :  { %p452_p0 = scmp.ne.s32.totalorder %s37_s30, %s451_s11  ;;  %p457_p2 = scmp.lt.s32.totalorder %s451_s11, %s451_s11 }
   0xb   :  { %p458_p3 = por %p457_p2, %p456_p1 }
   0xd   :  { %p459_p4 = pnand %p458_p3, %p452_p0 }
   0xf   :  { %462 = shalt.err (!%p459_p4)
}
  0x10   :  { %39 = dma.hbm_to_vmem [thread:$0]  %s667_s1, 128, %s37_s30, [#allocation7]  }
  0x11   :  { %s471_s13 = scalar_lea.vmem %s27_s10, 128  ;;  %p476_p6 = scmp.lt.s32.totalorder %s27_s10, %s27_s10 }
  0x12   :  { %p472_p5 = scmp.ne.s32.totalorder %s27_s10, %s471_s13  ;;  %p477_p7 = scmp.lt.s32.totalorder %s471_s13, %s471_s13 }
  0x14   :  { %p478_p8 = por %p477_p7, %p476_p6 }
  0x16   :  { %p479_p9 = pnand %p478_p8, %p472_p5 }
  0x18   :  { %482 = shalt.err (!%p479_p9)
}
  0x19   :  { %29 = dma.hbm_to_vmem [thread:$0]  %s666_s0, 128, %s27_s10, [#allocation4]  }
  0x1a   :  { %s553_s16 = smov [#allocation8]  }
  0x1b   :  { %s45_s17 = sshll.u32 %s553_s16, 4  ;;  %s46_s17 = int_to_ptr.vmem [resolvable:$true] %s45_s17 }
  0x1c   :  { %s491_s18 = scalar_lea.vmem %s46_s17, 2048  ;;  %p496_p11 = scmp.lt.s32.totalorder %s46_s17, %s46_s17 }
  0x1d   :  { %p492_p10 = scmp.ne.s32.totalorder %s46_s17, %s491_s18  ;;  %p497_p12 = scmp.lt.s32.totalorder %s491_s18, %s491_s18 }
  0x1f   :  { %p498_p13 = por %p497_p12, %p496_p11 }
  0x21   :  { %p499_p0 = pnand %p498_p13, %p492_p10 }
  0x23   :  { %502 = shalt.err (!%p499_p0)
}
  0x24   :  { %s554_s1 = smov 128   ;;  %s555_s19 = smov 8  }
  0x25   :  { %51 = dma.hbm_to_vmem [thread:$0]  %s668_s2, 2048, %s46_s17, [#allocation7], %s554_s1, %s554_s1, %s555_s19  }
  0x26   :  { %s556_s22 = smov [#allocation9]  }
  0x27   :  { %s57_s23 = sshll.u32 %s556_s22, 4  ;;  %s58_s23 = int_to_ptr.vmem [resolvable:$true] %s57_s23 }
  0x28   :  { %s511_s0 = scalar_lea.vmem %s58_s23, 2048  ;;  %p516_p2 = scmp.lt.s32.totalorder %s58_s23, %s58_s23 }
  0x29   :  { %p512_p1 = scmp.ne.s32.totalorder %s58_s23, %s511_s0  ;;  %p517_p3 = scmp.lt.s32.totalorder %s511_s0, %s511_s0 }
  0x2b   :  { %p518_p4 = por %p517_p3, %p516_p2 }
  0x2d   :  { %p519_p5 = pnand %p518_p4, %p512_p1 }
  0x2f   :  { %522 = shalt.err (!%p519_p5)
}
  0x30   :  { %63 = dma.hbm_to_vmem [thread:$0]  %s669_s3, 2048, %s58_s23, [#allocation10], %s554_s1, %s554_s1, %s555_s19  }
  0x31   :  { %543 = dma.done.wait [#allocation4], 128  }
  0x32   :  { %544 = vsyncadd [#allocation4], 4294967168 }
  0x33   :  { %545 = dma.done.wait [#allocation7], 2176  }
  0x34   :  { %546 = vsyncadd [#allocation7], 4294965120 }
  0x35   :  { %547 = dma.done.wait [#allocation10], 2048  }
  0x36   :  { %548 = vsyncadd [#allocation10], 4294965248  ;;  %v557_v1 = vmov 0.0   ;;  %vm558_vm0 = vmmov 0   ;;  %vm120_vm1 = vcmask 1040384   ;;  %v114_v4 = vld [vmem:[#allocation9 + $0x70] sm:$0xff] }
  0x37   :  { %364 = vmatprep.subr.mxu0 %v557_v1  ;;  %399 = vmatprep.subr.mxu1 %v557_v1  ;;  %v115_v2 = vld [vmem:[#allocation9 + $0x78] sm:$0x1]  ;;  %v97_v5 = vld [vmem:[#allocation8 + $0x70] sm:$0xff]  ;;  %v113_v6 = vld [vmem:[#allocation9 + $0x68] sm:$0xff]  ;;  %vm116_vm2 = vcmask 990208   ;;  %s559_s28 = smov [#allocation11]  }
  0x38   :  { %396 = vmatprep.mubr.msk.f32.mxu0 %vm558_vm0, %v557_v1  ;;  %431 = vmatprep.mubr.msk.f32.mxu1 %vm558_vm0, %v557_v1  ;;  %v98_v3 = vld [vmem:[#allocation8 + $0x78] sm:$0x1]  ;;  %v96_v7 = vld [vmem:[#allocation8 + $0x68] sm:$0xff]  ;;  %v112_v8 = vld [vmem:[#allocation9 + $0x60] sm:$0xff]  ;;  %s310_s29 = sshll.u32 %s559_s28, 4  ;;  %s311_s29 = int_to_ptr.vmem [resolvable:$true] %s310_s29 }
  0x39   :  { %365 = vmatpush3.msk.msra.mxu0 %vm120_vm1, %v115_v2  ;;  %400 = vmatpush3.msk.msra.mxu1 %vm120_vm1, %v98_v3  ;;  %v95_v9 = vld [vmem:[#allocation8 + $0x60] sm:$0xff]  ;;  %v111_v10 = vld [vmem:[#allocation9 + $0x58] sm:$0xff]  ;;  %v110_v12 = vld [vmem:[#allocation9 + $0x50] sm:$0xff]  ;;  %s523_s30 = scalar_lea.vmem %s311_s29, 128  ;;  %p528_p7 = scmp.lt.s32.totalorder %s311_s29, %s311_s29 }
  0x3a   :  { %366 = vmatprep.subr.mxu0 %v557_v1  ;;  %401 = vmatprep.subr.mxu1 %v557_v1  ;;  %v94_v11 = vld [vmem:[#allocation8 + $0x58] sm:$0xff]  ;;  %v93_v13 = vld [vmem:[#allocation8 + $0x50] sm:$0xff]  ;;  %v109_v14 = vld [vmem:[#allocation9 + $0x48] sm:$0xff]  ;;  %p524_p6 = scmp.ne.s32.totalorder %s311_s29, %s523_s30  ;;  %p529_p8 = scmp.lt.s32.totalorder %s523_s30, %s523_s30 }
  0x3b   :  { %367 = vmatpush3.msra.mxu0 %v114_v4  ;;  %402 = vmatpush3.msra.mxu1 %v97_v5  ;;  %v92_v15 = vld [vmem:[#allocation8 + $0x48] sm:$0xff]  ;;  %v108_v16 = vld [vmem:[#allocation9 + $0x40] sm:$0xff]  ;;  %v107_v18 = vld [vmem:[#allocation9 + $0x38] sm:$0xff] }
  0x3c   :  { %368 = vmatprep.subr.mxu0 %v557_v1  ;;  %403 = vmatprep.subr.mxu1 %v557_v1  ;;  %v91_v17 = vld [vmem:[#allocation8 + $0x40] sm:$0xff]  ;;  %v90_v19 = vld [vmem:[#allocation8 + $0x38] sm:$0xff]  ;;  %v106_v20 = vld [vmem:[#allocation9 + $0x30] sm:$0xff]  ;;  %p530_p9 = por %p529_p8, %p528_p7 }
  0x3d   :  { %369 = vmatpush3.msra.mxu0 %v113_v6  ;;  %404 = vmatpush3.msra.mxu1 %v96_v7  ;;  %v89_v21 = vld [vmem:[#allocation8 + $0x30] sm:$0xff]  ;;  %v105_v22 = vld [vmem:[#allocation9 + $0x28] sm:$0xff]  ;;  %v104_v24 = vld [vmem:[#allocation9 + $0x20] sm:$0xff] }
  0x3e   :  { %370 = vmatprep.subr.mxu0 %v557_v1  ;;  %405 = vmatprep.subr.mxu1 %v557_v1  ;;  %v88_v23 = vld [vmem:[#allocation8 + $0x28] sm:$0xff]  ;;  %v87_v25 = vld [vmem:[#allocation8 + $0x20] sm:$0xff]  ;;  %v103_v26 = vld [vmem:[#allocation9 + $0x18] sm:$0xff]  ;;  %p531_p10 = pnand %p530_p9, %p524_p6 }
  0x3f   :  { %371 = vmatpush3.msra.mxu0 %v112_v8  ;;  %406 = vmatpush3.msra.mxu1 %v95_v9  ;;  %v86_v27 = vld [vmem:[#allocation8 + $0x18] sm:$0xff]  ;;  %v102_v28 = vld [vmem:[#allocation9 + $0x10] sm:$0xff]  ;;  %v101_v30 = vld [vmem:[#allocation9 + $0x8] sm:$0xff] }
  0x40   :  { %372 = vmatprep.subr.mxu0 %v557_v1  ;;  %407 = vmatprep.subr.mxu1 %v557_v1  ;;  %v85_v29 = vld [vmem:[#allocation8 + $0x10] sm:$0xff]  ;;  %v84_v31 = vld [vmem:[#allocation8 + $0x8] sm:$0xff]  ;;  %v100_v32 = vld [vmem:[#allocation9] sm:$0xff] }
  0x41   :  { %373 = vmatpush3.msra.mxu0 %v111_v10  ;;  %408 = vmatpush3.msra.mxu1 %v94_v11  ;;  %v83_v33 = vld [vmem:[#allocation8] sm:$0xff]  ;;  %v99_v34 = vld [vmem:[#allocation6] sm:$0xff]  ;;  %v82_v35 = vld [vmem:[#allocation3] sm:$0xff] }
  0x42   :  { %374 = vmatprep.subr.mxu0 %v557_v1  ;;  %409 = vmatprep.subr.mxu1 %v557_v1  ;;  %v327_v38 = vld [vmem:[%s670_s4] ss:$0 sm:$0xff] }
  0x43   :  { %375 = vmatpush3.msra.mxu0 %v110_v12  ;;  %410 = vmatpush3.msra.mxu1 %v93_v13  ;;  %v328_v44 = vld [vmem:[%s671_s5] ss:$0 sm:$0xff] }
  0x44   :  { %376 = vmatprep.subr.mxu0 %v557_v1  ;;  %411 = vmatprep.subr.mxu1 %v557_v1 }
  0x45   :  { %377 = vmatpush3.msra.mxu0 %v109_v14  ;;  %412 = vmatpush3.msra.mxu1 %v92_v15 }
  0x46   :  { %378 = vmatprep.subr.mxu0 %v557_v1  ;;  %413 = vmatprep.subr.mxu1 %v557_v1 }
  0x47   :  { %379 = vmatpush3.msra.mxu0 %v108_v16  ;;  %414 = vmatpush3.msra.mxu1 %v91_v17 }
  0x48   :  { %380 = vmatprep.subr.mxu0 %v557_v1  ;;  %415 = vmatprep.subr.mxu1 %v557_v1 }
  0x49   :  { %381 = vmatpush3.msra.mxu0 %v107_v18  ;;  %416 = vmatpush3.msra.mxu1 %v90_v19 }
  0x4a   :  { %382 = vmatprep.subr.mxu0 %v557_v1  ;;  %417 = vmatprep.subr.mxu1 %v557_v1 }
  0x4b   :  { %383 = vmatpush3.msra.mxu0 %v106_v20  ;;  %418 = vmatpush3.msra.mxu1 %v89_v21 }
  0x4c   :  { %384 = vmatprep.subr.mxu0 %v557_v1  ;;  %419 = vmatprep.subr.mxu1 %v557_v1 }
  0x4d   :  { %385 = vmatpush3.msra.mxu0 %v105_v22  ;;  %420 = vmatpush3.msra.mxu1 %v88_v23 }
  0x4e   :  { %386 = vmatprep.subr.mxu0 %v557_v1  ;;  %421 = vmatprep.subr.mxu1 %v557_v1 }
  0x4f   :  { %387 = vmatpush3.msra.mxu0 %v104_v24  ;;  %422 = vmatpush3.msra.mxu1 %v87_v25 }
  0x50   :  { %388 = vmatprep.subr.mxu0 %v557_v1  ;;  %423 = vmatprep.subr.mxu1 %v557_v1 }
  0x51   :  { %389 = vmatpush3.msra.mxu0 %v103_v26  ;;  %424 = vmatpush3.msra.mxu1 %v86_v27 }
  0x52   :  { %390 = vmatprep.subr.mxu0 %v557_v1  ;;  %425 = vmatprep.subr.mxu1 %v557_v1 }
  0x53   :  { %391 = vmatpush3.msra.mxu0 %v102_v28  ;;  %426 = vmatpush3.msra.mxu1 %v85_v29 }
  0x54   :  { %392 = vmatprep.subr.mxu0 %v557_v1  ;;  %427 = vmatprep.subr.mxu1 %v557_v1 }
  0x55   :  { %393 = vmatpush3.msra.mxu0 %v101_v30  ;;  %428 = vmatpush3.msra.mxu1 %v84_v31 }
  0x56   :  { %394 = vmatprep.subr.mxu0 %v557_v1  ;;  %429 = vmatprep.subr.mxu1 %v557_v1 }
  0x57   :  { %395 = vmatpush3.msra.mxu0 %v100_v32  ;;  %430 = vmatpush3.msra.mxu1 %v83_v33 }
  0x58   :  { %397 = vmatmul.mubr.msk.f32.vlgmr.msra.gmra.mxu0 %vm116_vm2, %v99_v34  ;;  %432 = vmatmul.mubr.msk.f32.vlgmr.msra.gmra.mxu1 %vm116_vm2, %v82_v35 }
 0x118   :  { %v190_v36 = vpop.f32.mrf.mxu0  ;;  %v266_v37 = vpop.f32.mrf.mxu1 }
 0x119   :  { %v267_v39 = vadd.f32 %v266_v37, %v190_v36 }
 0x11a   :  { %v398_v40 = vpop.f32.mrf.mxu0  ;;  %v433_v41 = vpop.f32.mrf.mxu1 }
 0x11b   :  { %v277_v42 = vadd.f32 %v327_v38, %v267_v39 }
 0x11d   :  { %vm278_vm3 = vcmp.gt.f32.partialorder %v277_v42, 0.0  ;;  %v279_v43 = vmul.f32 0.01, %v277_v42 }
 0x11f   :  { %v280_v45 = vsel %vm278_vm3, %v277_v42, %v279_v43 }
 0x120   :  { %v289_v46 = vmul.f32 %v328_v44, %v280_v45  ;;  %281 = vst [vmem:[#allocation11] sm:$0xff] %v280_v45 }
 0x122   :  { %290 = vadd.xlane.f32.xlu0 %v289_v46 }
 0x123   :  { %534 = shalt.err (!%p531_p10)
}
 0x124   :  { %313 = dma.vmem_to_hbm [thread:$0]  %s311_s29, 128, %s674_s8, [#allocation5]   ;;  %v329_v47 = vld [vmem:[#allocation2] ss:$0 sm:$0xff]  ;;  %vm300_vm4 = vcmask 7168  }
 0x1ab   :  { %v291_v48 = vpop.xlane.xlu0 %290 }
 0x1ac   :  { %v299_v49 = vadd.f32 %v329_v47, %v291_v48 }
 0x1ae   :  { %301 = vst.msk [vmem:[%s673_s7] sm:$0xff] %vm300_vm4, %v299_v49 }
 0x1af   :  { %549 = dma.done.wait [#allocation5], 128  }
 0x1b0   :  { %550 = vsyncadd [#allocation5], 4294967168 }
 0x1b1   :  { %319 = vsyncpa [#allocation4], 1 }
 0x1b2   :  { %320 = vsyncpa [#allocation7], 1 }
 0x1b3   :  { %321 = vsyncpa [#allocation10], 1 }
 0x1b4   :  { %322 = vsyncpa [#allocation5], 1 }

</bundles_post_ra>
